<compile_context>
chip_gen: v7x
topology: tpu7x:2x2x1
jax: 0.10.0
libtpu: 0.0.40
codegen_flags: <defaults>
</compile_context>

<pallas_src>
import functools

import jax
import jax.numpy as jnp
from jax.experimental import pallas as pl
from jax.experimental.pallas import tpu as pltpu


# ------------------------------ Pallas kernel -------------------------------

def _betavae_kernel(x_ref, eps_ref, w1_ref, b1_ref, wml_ref, bml_ref,
                    wd1_ref, bd1_ref, wd2_ref, bd2_ref,
                    rec_ref, stats_ref):
    Z = eps_ref.shape[-1]

    # --- encoder: relu(x @ W1 + b1) -> [mu | logvar] via one fused matmul ---
    h = jnp.dot(x_ref[...], w1_ref[...], preferred_element_type=jnp.float32)
    h = jnp.maximum(h + b1_ref[...], 0.0)
    mulv = (jnp.dot(h.astype(jnp.bfloat16), wml_ref[...],
                    preferred_element_type=jnp.float32)
            + bml_ref[...])                                   # (TM, 2Z) f32
    mu = mulv[:, :Z]
    logvar = mulv[:, Z:]

    # --- reparameterize in f32 (matches reference: eps * logvar.exp()) ---
    z = mu + eps_ref[...] * jnp.exp(logvar)                   # (TM, Z) f32

    # --- decoder: relu(z @ Wd1 + bd1) @ Wd2 + bd2 ---
    hd = jnp.dot(z.astype(jnp.bfloat16), wd1_ref[...],
                 preferred_element_type=jnp.float32)
    hd = jnp.maximum(hd + bd1_ref[...], 0.0)
    rec_ref[...] = (jnp.dot(hd.astype(jnp.bfloat16), wd2_ref[...],
                            preferred_element_type=jnp.float32)
                    + bd2_ref[...])

    # --- packed stats slab [mu | logvar | z], one dense store ---
    stats_ref[...] = jnp.concatenate([mulv, z], axis=-1)


# ------------------------------ params / wrapper ----------------------------

def make_params(key, d_in, hidden, latent):
    ks = jax.random.split(key, 5)
    s = lambda fan_in: 1.0 / jnp.sqrt(fan_in)
    w1 = jax.random.normal(ks[0], (d_in, hidden), jnp.float32) * s(d_in)
    wmu = jax.random.normal(ks[1], (hidden, latent), jnp.float32) * s(hidden)
    wlv = jax.random.normal(ks[2], (hidden, latent), jnp.float32) * s(hidden)
    wd1 = jax.random.normal(ks[3], (latent, hidden), jnp.float32) * s(latent)
    wd2 = jax.random.normal(ks[4], (hidden, d_in), jnp.float32) * s(hidden)
    return {
        # matmul operands in bf16 (MXU-native), biases / accumulators f32
        "w1": w1.astype(jnp.bfloat16),
        "b1": jnp.zeros((1, hidden), jnp.float32),
        "wml": jnp.concatenate([wmu, wlv], axis=-1).astype(jnp.bfloat16),
        "bml": jnp.zeros((1, 2 * latent), jnp.float32),
        "wd1": wd1.astype(jnp.bfloat16),
        "bd1": jnp.zeros((1, hidden), jnp.float32),
        "wd2": wd2.astype(jnp.bfloat16),
        "bd2": jnp.zeros((1, d_in), jnp.float32),
    }


def betavae_forward(x, params, rng_key, *, n_images):
    """x: (B, C, H, W) float32 NCHW. Returns dict like the torch module."""
    B, C, H, W = x.shape
    w_slice = W // n_images
    d_in = C * H * w_slice
    Z = params["wml"].shape[1] // 2

    # Single up-front relayout: (B,C,H,W) -> (n_images*B, C*H*w_slice).
    # Slice i of torch.split(x, W//n, -1) becomes rows [i*B:(i+1)*B].
    x_sl = x.reshape(B, C, H, n_images, w_slice)
    x_sl = jnp.transpose(x_sl, (3, 0, 1, 2, 4))                 # (n,B,C,H,ws)
    x_flat = x_sl.reshape(n_images * B, d_in).astype(jnp.bfloat16)

    eps = jax.random.normal(rng_key, (n_images * B, Z), jnp.float32)

    M = n_images * B
    if M >= 128:
        TM = 128
    else:
        TM = max(8, ((M + 7) // 8) * 8)          # sublane-aligned row tile
    M_pad = ((M + TM - 1) // TM) * TM
    if M_pad != M:
        x_flat = jnp.pad(x_flat, ((0, M_pad - M), (0, 0)))
        eps = jnp.pad(eps, ((0, M_pad - M), (0, 0)))

    row_spec = lambda n: pl.BlockSpec((TM, n), lambda i: (i, 0))
    full_spec = lambda arr: pl.BlockSpec(arr.shape, lambda i: (0, 0))

    rec_flat, stats = pl.pallas_call(
        _betavae_kernel,
        out_shape=(jax.ShapeDtypeStruct((M_pad, d_in), jnp.float32),
                   jax.ShapeDtypeStruct((M_pad, 3 * Z), jnp.float32)),
        grid=(M_pad // TM,),
        in_specs=[row_spec(d_in), row_spec(Z),
                  full_spec(params["w1"]), full_spec(params["b1"]),
                  full_spec(params["wml"]), full_spec(params["bml"]),
                  full_spec(params["wd1"]), full_spec(params["bd1"]),
                  full_spec(params["wd2"]), full_spec(params["bd2"])],
        out_specs=(row_spec(d_in), row_spec(3 * Z)),
        compiler_params=pltpu.CompilerParams(
            dimension_semantics=("parallel",),
            vmem_limit_bytes=48 * 1024 * 1024),
    )(x_flat, eps,
      params["w1"], params["b1"], params["wml"], params["bml"],
      params["wd1"], params["bd1"], params["wd2"], params["bd2"])

    rec_flat = rec_flat[:M]
    stats = stats[:M]

    # RECS: rows back to (B, C, H, W) with slice i occupying W cols i*ws:(i+1)*ws
    rec = rec_flat.reshape(n_images, B, C, H, w_slice)
    rec = jnp.transpose(rec, (1, 2, 3, 0, 4)).reshape(B, C, H, W)

    def unpack(col):
        v = stats[:, col:col + Z].reshape(n_images, B, Z)
        return jnp.transpose(v, (1, 0, 2)).reshape(B, n_images * Z)

    return {
        "RECS": rec,
        "MUS": unpack(0),
        "LOGVARS": unpack(Z),
        "LATENTS": unpack(2 * Z),
    }


# ---------------------------------- main -------------------------------------

if __name__ == "__main__":
    B, C, H, W = 2, 4, 16, 16
    n_images = 2
    hidden, latent = 64, 16
    d_in = C * H * (W // n_images)

    key = jax.random.PRNGKey(0)
    k_x, k_p, k_eps = jax.random.split(key, 3)

    x = jax.random.normal(k_x, (B, C, H, W), jnp.float32)
    params = make_params(k_p, d_in, hidden, latent)

    fwd = jax.jit(functools.partial(betavae_forward, n_images=n_images))
    out = fwd(x, params, k_eps)
    out = jax.tree_util.tree_map(jax.block_until_ready, out)

    assert out["RECS"].shape == (B, C, H, W)
    assert out["MUS"].shape == (B, n_images * latent)
    assert out["LOGVARS"].shape == (B, n_images * latent)
    assert out["LATENTS"].shape == (B, n_images * latent)
    assert all(bool(jnp.all(jnp.isfinite(v))) for v in out.values())

    print("KERNEL_OK")
</pallas_src>

<mosaic_0001>
module attributes {stable_mosaic.version = 11 : i64} {
  func.func @_betavae_kernel(%arg0: i32, %arg1: memref<8x512xbf16, #tpu.memory_space<vmem>>, %arg2: memref<8x16xf32, #tpu.memory_space<vmem>>, %arg3: memref<512x64xbf16, #tpu.memory_space<vmem>>, %arg4: memref<1x64xf32, #tpu.memory_space<vmem>>, %arg5: memref<64x32xbf16, #tpu.memory_space<vmem>>, %arg6: memref<1x32xf32, #tpu.memory_space<vmem>>, %arg7: memref<16x64xbf16, #tpu.memory_space<vmem>>, %arg8: memref<1x64xf32, #tpu.memory_space<vmem>>, %arg9: memref<64x512xbf16, #tpu.memory_space<vmem>>, %arg10: memref<1x512xf32, #tpu.memory_space<vmem>>, %arg11: memref<8x512xf32, #tpu.memory_space<vmem>>, %arg12: memref<8x48xf32, #tpu.memory_space<vmem>>) attributes {dimension_semantics = [#tpu.dimension_semantics<parallel>], iteration_bounds = array<i64: 1>, scalar_prefetch = 0 : i64, scratch_operands = 0 : i64, tpu.core_type = #tpu.core_type<tc>, window_params = [{transform_indices = @transform_0, window_bounds = array<i64: 8, 512>}, {transform_indices = @transform_1, window_bounds = array<i64: 8, 16>}, {pipeline_mode = #tpu.pipeline_mode<synchronous>, transform_indices = @transform_2, window_bounds = array<i64: 512, 64>}, {pipeline_mode = #tpu.pipeline_mode<synchronous>, transform_indices = @transform_3, window_bounds = array<i64: 1, 64>}, {pipeline_mode = #tpu.pipeline_mode<synchronous>, transform_indices = @transform_4, window_bounds = array<i64: 64, 32>}, {pipeline_mode = #tpu.pipeline_mode<synchronous>, transform_indices = @transform_5, window_bounds = array<i64: 1, 32>}, {pipeline_mode = #tpu.pipeline_mode<synchronous>, transform_indices = @transform_6, window_bounds = array<i64: 16, 64>}, {pipeline_mode = #tpu.pipeline_mode<synchronous>, transform_indices = @transform_7, window_bounds = array<i64: 1, 64>}, {pipeline_mode = #tpu.pipeline_mode<synchronous>, transform_indices = @transform_8, window_bounds = array<i64: 64, 512>}, {pipeline_mode = #tpu.pipeline_mode<synchronous>, transform_indices = @transform_9, window_bounds = array<i64: 1, 512>}, {transform_indices = @transform_10, window_bounds = array<i64: 8, 512>}, {transform_indices = @transform_11, window_bounds = array<i64: 8, 48>}]} {
    %c0 = arith.constant 0 : index
    %c0_0 = arith.constant 0 : index
    %0 = vector.load %arg1[%c0, %c0_0] : memref<8x512xbf16, #tpu.memory_space<vmem>>, vector<8x512xbf16>
    %c0_1 = arith.constant 0 : index
    %c0_2 = arith.constant 0 : index
    %1 = vector.load %arg3[%c0_1, %c0_2] : memref<512x64xbf16, #tpu.memory_space<vmem>>, vector<512x64xbf16>
    %cst = arith.constant dense<0.000000e+00> : vector<8x64xf32>
    %2 = tpu.matmul %0, %1, %cst {dimension_numbers = #tpu.dot_dimension_numbers<[1], [0], [0], [1], [0, 0, 1, 1], [], []>} : vector<8x512xbf16>, vector<512x64xbf16>, vector<8x64xf32> -> vector<8x64xf32>
    %c0_3 = arith.constant 0 : index
    %c0_4 = arith.constant 0 : index
    %3 = vector.load %arg4[%c0_3, %c0_4] : memref<1x64xf32, #tpu.memory_space<vmem>>, vector<1x64xf32>
    %4 = vector.broadcast %3 : vector<1x64xf32> to vector<8x64xf32>
    %5 = arith.addf %2, %4 : vector<8x64xf32>
    %cst_5 = arith.constant 0.000000e+00 : f32
    %6 = vector.broadcast %cst_5 : f32 to vector<8x64xf32>
    %7 = arith.maximumf %5, %6 : vector<8x64xf32>
    %8 = arith.truncf %7 : vector<8x64xf32> to vector<8x64xbf16>
    %c0_6 = arith.constant 0 : index
    %c0_7 = arith.constant 0 : index
    %9 = vector.load %arg5[%c0_6, %c0_7] : memref<64x32xbf16, #tpu.memory_space<vmem>>, vector<64x32xbf16>
    %cst_8 = arith.constant dense<0.000000e+00> : vector<8x32xf32>
    %10 = tpu.matmul %8, %9, %cst_8 {dimension_numbers = #tpu.dot_dimension_numbers<[1], [0], [0], [1], [0, 0, 1, 1], [], []>} : vector<8x64xbf16>, vector<64x32xbf16>, vector<8x32xf32> -> vector<8x32xf32>
    %c0_9 = arith.constant 0 : index
    %c0_10 = arith.constant 0 : index
    %11 = vector.load %arg6[%c0_9, %c0_10] : memref<1x32xf32, #tpu.memory_space<vmem>>, vector<1x32xf32>
    %12 = vector.broadcast %11 : vector<1x32xf32> to vector<8x32xf32>
    %13 = arith.addf %10, %12 : vector<8x32xf32>
    %14 = vector.extract_strided_slice %13 {offsets = [0, 0], sizes = [8, 16], strides = [1, 1]} : vector<8x32xf32> to vector<8x16xf32>
    %15 = vector.extract_strided_slice %13 {offsets = [0, 16], sizes = [8, 16], strides = [1, 1]} : vector<8x32xf32> to vector<8x16xf32>
    %c0_11 = arith.constant 0 : index
    %c0_12 = arith.constant 0 : index
    %16 = vector.load %arg2[%c0_11, %c0_12] : memref<8x16xf32, #tpu.memory_space<vmem>>, vector<8x16xf32>
    %17 = math.exp %15 : vector<8x16xf32>
    %18 = arith.mulf %16, %17 : vector<8x16xf32>
    %19 = arith.addf %14, %18 : vector<8x16xf32>
    %20 = arith.truncf %19 : vector<8x16xf32> to vector<8x16xbf16>
    %c0_13 = arith.constant 0 : index
    %c0_14 = arith.constant 0 : index
    %21 = vector.load %arg7[%c0_13, %c0_14] : memref<16x64xbf16, #tpu.memory_space<vmem>>, vector<16x64xbf16>
    %cst_15 = arith.constant dense<0.000000e+00> : vector<8x64xf32>
    %22 = tpu.matmul %20, %21, %cst_15 {dimension_numbers = #tpu.dot_dimension_numbers<[1], [0], [0], [1], [0, 0, 1, 1], [], []>} : vector<8x16xbf16>, vector<16x64xbf16>, vector<8x64xf32> -> vector<8x64xf32>
    %c0_16 = arith.constant 0 : index
    %c0_17 = arith.constant 0 : index
    %23 = vector.load %arg8[%c0_16, %c0_17] : memref<1x64xf32, #tpu.memory_space<vmem>>, vector<1x64xf32>
    %24 = vector.broadcast %23 : vector<1x64xf32> to vector<8x64xf32>
    %25 = arith.addf %22, %24 : vector<8x64xf32>
    %cst_18 = arith.constant 0.000000e+00 : f32
    %26 = vector.broadcast %cst_18 : f32 to vector<8x64xf32>
    %27 = arith.maximumf %25, %26 : vector<8x64xf32>
    %28 = arith.truncf %27 : vector<8x64xf32> to vector<8x64xbf16>
    %c0_19 = arith.constant 0 : index
    %c0_20 = arith.constant 0 : index
    %29 = vector.load %arg9[%c0_19, %c0_20] : memref<64x512xbf16, #tpu.memory_space<vmem>>, vector<64x512xbf16>
    %cst_21 = arith.constant dense<0.000000e+00> : vector<8x512xf32>
    %30 = tpu.matmul %28, %29, %cst_21 {dimension_numbers = #tpu.dot_dimension_numbers<[1], [0], [0], [1], [0, 0, 1, 1], [], []>} : vector<8x64xbf16>, vector<64x512xbf16>, vector<8x512xf32> -> vector<8x512xf32>
    %c0_22 = arith.constant 0 : index
    %c0_23 = arith.constant 0 : index
    %31 = vector.load %arg10[%c0_22, %c0_23] : memref<1x512xf32, #tpu.memory_space<vmem>>, vector<1x512xf32>
    %32 = vector.broadcast %31 : vector<1x512xf32> to vector<8x512xf32>
    %33 = arith.addf %30, %32 : vector<8x512xf32>
    %c0_24 = arith.constant 0 : index
    %c0_25 = arith.constant 0 : index
    %34 = vector.load %arg11[%c0_24, %c0_25] : memref<8x512xf32, #tpu.memory_space<vmem>>, vector<8x512xf32>
    tpu.vector_store %arg11[%c0_24, %c0_25], %33 {strides = array<i32>} : memref<8x512xf32, #tpu.memory_space<vmem>>, vector<8x512xf32>,
    %35 = tpu.concatenate %13, %19 in 1 : vector<8x32xf32>, vector<8x16xf32> -> vector<8x48xf32>
    %c0_26 = arith.constant 0 : index
    %c0_27 = arith.constant 0 : index
    %36 = vector.load %arg12[%c0_26, %c0_27] : memref<8x48xf32, #tpu.memory_space<vmem>>, vector<8x48xf32>
    tpu.vector_store %arg12[%c0_26, %c0_27], %35 {strides = array<i32>} : memref<8x48xf32, #tpu.memory_space<vmem>>, vector<8x48xf32>,
    return
  }
  func.func @transform_0(%arg0: i32) -> (i32, i32) {
    %c0_i32 = arith.constant 0 : i32
    %c0_i32_0 = arith.constant 0 : i32
    return %arg0, %c0_i32 : i32, i32
  }
  func.func @transform_1(%arg0: i32) -> (i32, i32) {
    %c0_i32 = arith.constant 0 : i32
    %c0_i32_0 = arith.constant 0 : i32
    return %arg0, %c0_i32 : i32, i32
  }
  func.func @transform_2(%arg0: i32) -> (i32, i32) {
    %c0_i32 = arith.constant 0 : i32
    %c0_i32_0 = arith.constant 0 : i32
    %c0_i32_1 = arith.constant 0 : i32
    return %c0_i32, %c0_i32_0 : i32, i32
  }
  func.func @transform_3(%arg0: i32) -> (i32, i32) {
    %c0_i32 = arith.constant 0 : i32
    %c0_i32_0 = arith.constant 0 : i32
    %c0_i32_1 = arith.constant 0 : i32
    return %c0_i32, %c0_i32_0 : i32, i32
  }
  func.func @transform_4(%arg0: i32) -> (i32, i32) {
    %c0_i32 = arith.constant 0 : i32
    %c0_i32_0 = arith.constant 0 : i32
    %c0_i32_1 = arith.constant 0 : i32
    return %c0_i32, %c0_i32_0 : i32, i32
  }
  func.func @transform_5(%arg0: i32) -> (i32, i32) {
    %c0_i32 = arith.constant 0 : i32
    %c0_i32_0 = arith.constant 0 : i32
    %c0_i32_1 = arith.constant 0 : i32
    return %c0_i32, %c0_i32_0 : i32, i32
  }
  func.func @transform_6(%arg0: i32) -> (i32, i32) {
    %c0_i32 = arith.constant 0 : i32
    %c0_i32_0 = arith.constant 0 : i32
    %c0_i32_1 = arith.constant 0 : i32
    return %c0_i32, %c0_i32_0 : i32, i32
  }
  func.func @transform_7(%arg0: i32) -> (i32, i32) {
    %c0_i32 = arith.constant 0 : i32
    %c0_i32_0 = arith.constant 0 : i32
    %c0_i32_1 = arith.constant 0 : i32
    return %c0_i32, %c0_i32_0 : i32, i32
  }
  func.func @transform_8(%arg0: i32) -> (i32, i32) {
    %c0_i32 = arith.constant 0 : i32
    %c0_i32_0 = arith.constant 0 : i32
    %c0_i32_1 = arith.constant 0 : i32
    return %c0_i32, %c0_i32_0 : i32, i32
  }
  func.func @transform_9(%arg0: i32) -> (i32, i32) {
    %c0_i32 = arith.constant 0 : i32
    %c0_i32_0 = arith.constant 0 : i32
    %c0_i32_1 = arith.constant 0 : i32
    return %c0_i32, %c0_i32_0 : i32, i32
  }
  func.func @transform_10(%arg0: i32) -> (i32, i32) {
    %c0_i32 = arith.constant 0 : i32
    %c0_i32_0 = arith.constant 0 : i32
    return %arg0, %c0_i32 : i32, i32
  }
  func.func @transform_11(%arg0: i32) -> (i32, i32) {
    %c0_i32 = arith.constant 0 : i32
    %c0_i32_0 = arith.constant 0 : i32
    return %arg0, %c0_i32 : i32, i32
  }
}

</mosaic_0001>

<bundles_post_ra>
// kernel: betavae_forward.1
= control target key start
LH: loop header
LB: loop body
LE: loop exit
PB: predicated region body
PF: predicated region fallthrough
CT: control target
= control target key end

     0   :  { %v981_v39 = vmov 0.0   ;;  %vm982_vm0 = vmmov 0   ;;  %vm438_vm1 = vcmask 523264   ;;  %s983_s19 = smov 112   ;;  %vm507_vm2 = vcmask 130048   ;;  %s984_s14 = smov 32   ;;  %s1244_s2 = inlined_call_operand.vmem [shape: bf16[512,64], index: 2, kind: input, shape index: {}]   ;;  %s1245_s0 = inlined_call_operand.vmem [shape: bf16[8,512], index: 0, kind: input, shape index: {}]   ;;  %s1246_s4 = inlined_call_operand.vmem [shape: bf16[64,32], index: 4, kind: input, shape index: {}]   ;;  %s1247_s3 = inlined_call_operand.vmem [shape: f32[1,64], index: 3, kind: input, shape index: {}]   ;;  %s1248_s6 = inlined_call_operand.vmem [shape: bf16[16,64], index: 6, kind: input, shape index: {}]   ;;  %s1249_s5 = inlined_call_operand.vmem [shape: f32[1,32], index: 5, kind: input, shape index: {}]   ;;  %s1250_s8 = inlined_call_operand.vmem [shape: bf16[64,512], index: 8, kind: input, shape index: {}]   ;;  %s1251_s1 = inlined_call_operand.vmem [shape: f32[8,16], index: 1, kind: input, shape index: {}]   ;;  %s1252_s11 = inlined_call_operand.vmem [shape: f32[8,48], index: 11, kind: output, shape index: {1}]   ;;  %s1253_s7 = inlined_call_operand.vmem [shape: f32[1,64], index: 7, kind: input, shape index: {}]   ;;  %s1254_s9 = inlined_call_operand.vmem [shape: f32[1,512], index: 9, kind: input, shape index: {}]   ;;  %s1255_s10 = inlined_call_operand.vmem [shape: f32[8,512], index: 10, kind: output, shape index: {0}]  }
   0x1   :  { %v914_v0 = vld [vmem:[%s1244_s2 + $0x40] sm:$0xff]   ;;  %v918_v4 = vld [vmem:[%s1244_s2 + $0x48] sm:$0xff]   ;;  %v922_v8 = vld [vmem:[%s1244_s2 + $0x50] sm:$0xff]   ;;  %vm764_vm3 = vcmask 261120   ;;  %vm766_vm4 = vcmask 392192  }
   0x2   :  { %v915_v1 = vld [vmem:[%s1244_s2 + $0xc0] sm:$0xff]   ;;  %840 = vmatprep.subr.bf16.mxu0 %v914_v0  ;;  %v919_v5 = vld [vmem:[%s1244_s2 + $0xc8] sm:$0xff]   ;;  %v923_v9 = vld [vmem:[%s1244_s2 + $0xd0] sm:$0xff]  }
   0x3   :  { %v916_v2 = vld [vmem:[%s1244_s2] sm:$0xff]   ;;  %862 = vmatprep.subr.bf16.mxu1 %v915_v1  ;;  %v920_v6 = vld [vmem:[%s1244_s2 + $0x8] sm:$0xff]   ;;  %v924_v10 = vld [vmem:[%s1244_s2 + $0x10] sm:$0xff]  }
   0x4   :  { %v917_v3 = vld [vmem:[%s1244_s2 + $0x80] sm:$0xff]   ;;  %841 = vmatpush3.bf16.msra.mxu0 %v916_v2  ;;  %v921_v7 = vld [vmem:[%s1244_s2 + $0x88] sm:$0xff]   ;;  %v925_v11 = vld [vmem:[%s1244_s2 + $0x90] sm:$0xff]  }
   0x5   :  { %863 = vmatpush3.bf16.msra.mxu1 %v917_v3  ;;  %842 = vmatprep.subr.bf16.mxu0 %v918_v4  ;;  %v926_v12 = vld [vmem:[%s1244_s2 + $0x58] sm:$0xff]   ;;  %v930_v16 = vld [vmem:[%s1244_s2 + $0x60] sm:$0xff]   ;;  %v934_v20 = vld [vmem:[%s1244_s2 + $0x68] sm:$0xff]  }
   0x6   :  { %864 = vmatprep.subr.bf16.mxu1 %v919_v5  ;;  %v927_v13 = vld [vmem:[%s1244_s2 + $0xd8] sm:$0xff]   ;;  %v931_v17 = vld [vmem:[%s1244_s2 + $0xe0] sm:$0xff]   ;;  %v935_v21 = vld [vmem:[%s1244_s2 + $0xe8] sm:$0xff]  }
   0x7   :  { %v928_v14 = vld [vmem:[%s1244_s2 + $0x18] sm:$0xff]   ;;  %v932_v18 = vld [vmem:[%s1244_s2 + $0x20] sm:$0xff]   ;;  %v936_v22 = vld [vmem:[%s1244_s2 + $0x28] sm:$0xff]  }
   0x8   :  { %843 = vmatpush3.bf16.msra.mxu0 %v920_v6  ;;  %v929_v15 = vld [vmem:[%s1244_s2 + $0x98] sm:$0xff]   ;;  %v933_v19 = vld [vmem:[%s1244_s2 + $0xa0] sm:$0xff]   ;;  %v937_v23 = vld [vmem:[%s1244_s2 + $0xa8] sm:$0xff]  }
   0x9   :  { %865 = vmatpush3.bf16.msra.mxu1 %v921_v7  ;;  %844 = vmatprep.subr.bf16.mxu0 %v922_v8  ;;  %v938_v24 = vld [vmem:[%s1244_s2 + $0x70] sm:$0xff]   ;;  %v942_v28 = vld [vmem:[%s1244_s2 + $0x78] sm:$0xff]   ;;  %v38_v32 = vld [vmem:[%s1245_s0] sm:$0xff] }
   0xa   :  { %866 = vmatprep.subr.bf16.mxu1 %v923_v9  ;;  %v939_v25 = vld [vmem:[%s1244_s2 + $0xf0] sm:$0xff]   ;;  %v943_v29 = vld [vmem:[%s1244_s2 + $0xf8] sm:$0xff]   ;;  %v39_v33 = vld [vmem:[%s1245_s0 + $0x8] sm:$0xff]  ;;  %v777_v34 = vcombine.low %v38_v32, %v38_v32  ;;  %v778_v35 = vcombine.high %v38_v32, %v38_v32 }
   0xb   :  { %v940_v26 = vld [vmem:[%s1244_s2 + $0x30] sm:$0xff]   ;;  %v944_v30 = vld [vmem:[%s1244_s2 + $0x38] sm:$0xff]   ;;  %v779_v36 = vcombine.low %v39_v33, %v39_v33  ;;  %v780_v37 = vcombine.high %v39_v33, %v39_v33  ;;  %v950_v38 = vld [vmem:[%s1246_s4] sm:$0xff]  }
   0xc   :  { %845 = vmatpush3.bf16.msra.mxu0 %v924_v10  ;;  %v941_v27 = vld [vmem:[%s1244_s2 + $0xb0] sm:$0xff]   ;;  %v945_v31 = vld [vmem:[%s1244_s2 + $0xb8] sm:$0xff]   ;;  %349 = vmatprep.mubr.bf16.mxu0 %v778_v35  ;;  %v951_v40 = vld [vmem:[%s1246_s4 + $0x8] sm:$0xff]   ;;  %v571_v35 = vlaneseq }
   0xd   :  { %867 = vmatpush3.bf16.msra.mxu1 %v925_v11  ;;  %846 = vmatprep.subr.bf16.mxu0 %v926_v12  ;;  %v952_v41 = vld [vmem:[%s1246_s4 + $0x10] sm:$0xff]   ;;  %v953_v42 = vld [vmem:[%s1246_s4 + $0x18] sm:$0xff]   ;;  %v776_v45 = vld [vmem:[%s1247_s3] ss:$0 sm:$0xff] }
   0xe   :  { %868 = vmatprep.subr.bf16.mxu1 %v927_v13  ;;  %389 = vmatprep.mubr.bf16.mxu1 %v780_v37  ;;  %v954_v58 = vld [vmem:[%s1248_s6] sm:$0xff]   ;;  %v958_v4 = vld [vmem:[%s1250_s8 + $0x8] ss:$16 sps:$4 sm:$0xff]   ;;  %v960_v5 = vld [vmem:[%s1250_s8 + $0xc] ss:$16 sps:$4 sm:$0xff]  }
   0xf   :  { %v813_v59 = vld [vmem:[%s1249_s5] ss:$0 sm:$0xff]  ;;  %v957_v3 = vld [vmem:[%s1250_s8 + $0x4] ss:$16 sps:$4 sm:$0xff]   ;;  %v964_v7 = vld [vmem:[%s1250_s8 + $0x28] ss:$16 sps:$4 sm:$0xff]  }
  0x10   :  { %847 = vmatpush3.bf16.msra.mxu0 %v928_v14  ;;  %v482_v6 = vld [vmem:[%s1251_s1] sm:$0xff]  ;;  %v966_v8 = vld [vmem:[%s1250_s8 + $0x2c] ss:$16 sps:$4 sm:$0xff]   ;;  %v970_v13 = vld [vmem:[%s1250_s8 + $0x48] ss:$16 sps:$4 sm:$0xff]  }
  0x11   :  { %869 = vmatpush3.bf16.msra.mxu1 %v929_v15  ;;  %848 = vmatprep.subr.bf16.mxu0 %v930_v16  ;;  %v972_v11 = vld [vmem:[%s1250_s8 + $0x4c] ss:$16 sps:$4 sm:$0xff]   ;;  %v955_v14 = vld [vmem:[%s1250_s8] ss:$16 sps:$4 sm:$0xff]   ;;  %v963_v16 = vld [vmem:[%s1250_s8 + $0x24] ss:$16 sps:$4 sm:$0xff]  }
  0x12   :  { %870 = vmatprep.subr.bf16.mxu1 %v931_v17  ;;  %v961_v17 = vld [vmem:[%s1250_s8 + $0x20] ss:$16 sps:$4 sm:$0xff]  }
  0x14   :  { %849 = vmatpush3.bf16.msra.mxu0 %v932_v18  ;;  %v969_v18 = vld [vmem:[%s1250_s8 + $0x44] ss:$16 sps:$4 sm:$0xff]  }
  0x15   :  { %871 = vmatpush3.bf16.msra.mxu1 %v933_v19  ;;  %850 = vmatprep.subr.bf16.mxu0 %v934_v20  ;;  %v967_v19 = vld [vmem:[%s1250_s8 + $0x40] ss:$16 sps:$4 sm:$0xff]   ;;  %v975_v20 = vld [vmem:[%s1250_s8 + $0x64] ss:$16 sps:$4 sm:$0xff]  }
  0x16   :  { %872 = vmatprep.subr.bf16.mxu1 %v935_v21  ;;  %v978_v21 = vld [vmem:[%s1250_s8 + $0x6c] ss:$16 sps:$4 sm:$0xff]  }
  0x18   :  { %851 = vmatpush3.bf16.msra.mxu0 %v936_v22  ;;  %v973_v22 = vld [vmem:[%s1250_s8 + $0x60] ss:$16 sps:$4 sm:$0xff]  }
  0x19   :  { %873 = vmatpush3.bf16.msra.mxu1 %v937_v23  ;;  %852 = vmatprep.subr.bf16.mxu0 %v938_v24  ;;  %v976_v23 = vld [vmem:[%s1250_s8 + $0x68] ss:$16 sps:$4 sm:$0xff]   ;;  %v985_v24 = vmov 0  }
  0x1a   :  { %874 = vmatprep.subr.bf16.mxu1 %v939_v25 }
  0x1c   :  { %853 = vmatpush3.bf16.msra.mxu0 %v940_v26 }
  0x1d   :  { %875 = vmatpush3.bf16.msra.mxu1 %v941_v27  ;;  %854 = vmatprep.subr.bf16.mxu0 %v942_v28  ;;  %v819_v27 = vld [vmem:[%s1253_s7] ss:$0 sm:$0xff] }
  0x1e   :  { %876 = vmatprep.subr.bf16.mxu1 %v943_v29 }
  0x20   :  { %855 = vmatpush3.bf16.msra.mxu0 %v944_v30 }
  0x21   :  { %877 = vmatpush3.bf16.msra.mxu1 %v945_v31  ;;  %891 = vmatprep.subr.bf16.mxu0 %v981_v39 }
  0x22   :  { %903 = vmatprep.subr.bf16.mxu1 %v981_v39 }
  0x23   :  { %350 = vmatmul.mubr.bf16.vlgmr.msra.gmra.mrb[0].mxu0 %v777_v34 }
  0x24   :  { %390 = vmatmul.mubr.bf16.vlgmr.msra.gmra.mrb[0].mxu1 %v779_v36  ;;  %892 = vmatpush3.bf16.msra.mxu0 %v950_v38  ;;  %v572_v36 = vshrl.u32 %v571_v35, 7 }
  0x25   :  { %893 = vmatprep.subr.bf16.mxu0 %v981_v39  ;;  %899 = vmatprep.mubr.msk.bf16.mxu0 %vm982_vm0, %v981_v39 }
  0x26   :  { %905 = vmatprep.mubr.msk.bf16.mxu1 %vm982_vm0, %v981_v39  ;;  %904 = vmatpush3.bf16.msra.mxu1 %v954_v58  ;;  %v573_v37 = vsub.s32 0, %v572_v36  ;;  %v581_v38 = vsub.s32 2, %v572_v36 }
  0x27   :  { %674 = vmatprep.subr.bf16.mxu1 %v957_v3 }
  0x28   :  { %894 = vmatpush3.bf16.msra.mxu0 %v951_v40  ;;  %v577_v40 = vsub.s32 1, %v572_v36 }
  0x29   :  { %895 = vmatprep.subr.bf16.mxu0 %v981_v39 }
  0x2c   :  { %896 = vmatpush3.bf16.msra.mxu0 %v952_v41  ;;  %v585_v41 = vsub.s32 3, %v572_v36 }
  0x2d   :  { %897 = vmatprep.subr.bf16.mxu0 %v981_v39  ;;  %v569_v39 = vld [vmem:[%s1254_s9] sm:$0xf] }
  0x30   :  { %898 = vmatpush3.bf16.msra.mxu0 %v953_v42  ;;  %v574_v42 = vrot.slane %v569_v39, %v573_v37 }
  0x31   :  { %715 = vmatprep.subr.bf16.mxu0 %v960_v5 }
  0xf6   :  { %v856_v43 = vpop.f32.mrb[0].mxu0 }
  0xf7   :  { %v878_v44 = vpop.f32.mrb[0].mxu1  ;;  %v857_v46 = vpop.f32.mrb[1].mxu0 }
  0xf8   :  { %v879_v47 = vpop.f32.mrb[1].mxu1  ;;  %v858_v48 = vadd.f32 %v857_v46, %v856_v43  ;;  %v859_v50 = vpop.f32.mrb[2].mxu0  ;;  %v582_v43 = vrot.slane %v569_v39, %v581_v38 }
  0xf9   :  { %v880_v49 = vadd.f32 %v879_v47, %v878_v44  ;;  %v881_v51 = vpop.f32.mrb[2].mxu1  ;;  %v860_v52 = vpop.f32.mrb[3].mxu0  ;;  %v578_v44 = vrot.slane %v569_v39, %v577_v40 }
  0xfa   :  { %v882_v53 = vpop.f32.mrb[3].mxu1  ;;  %v352_v54 = vadd.f32 %v858_v48, %v776_v45  ;;  %v586_v45 = vrot.slane %v569_v39, %v585_v41 }
  0xfc   :  { %v392_v55 = vadd.f32 %v880_v49, %v352_v54 }
  0xfe   :  { %v397_v56 = vmax.f32 %v392_v55, 0.0 }
 0x100   :  { %v398_v57 = vpack.c.bf16 %v397_v56, %v397_v56 }
 0x102   :  { %900 = vmatmul.mubr.msk.bf16.vlgmr.msra.gmra.mrb[4].mxu0 %vm438_vm1, %v398_v57 }
 0x103   :  { %716 = vmatpush1.bf16.msra.mxu0 %v958_v4  ;;  %747 = vmatprep.mubr.bf16.mxu0 %v985_v24 }
 0x104   :  { %717 = vmatprep.subr.bf16.mxu0 %v966_v8 }
 0x107   :  { %718 = vmatpush1.bf16.msra.mxu0 %v964_v7 }
 0x108   :  { %719 = vmatprep.subr.bf16.mxu0 %v972_v11 }
 0x10b   :  { %720 = vmatpush1.bf16.msra.mxu0 %v970_v13 }
 0x10c   :  { %721 = vmatprep.subr.bf16.mxu0 %v978_v21 }
 0x10f   :  { %722 = vmatpush1.bf16.msra.mxu0 %v976_v23 }
 0x1d5   :  { %v476_v60 = vpop.f32.mrb[4].mxu0 }
 0x1d6   :  { %v477_v61 = vadd.f32 %v813_v59, %v476_v60  ;;  %v901_v62 = vpop.f32.mrb[5].mxu0 }
 0x1d7   :  { %v479_v63 = vpop.f32.mrb[6].mxu0 }
 0x1d8   :  { %v483_v0 = vmul.f32 1.442695, %v477_v61  ;;  %v902_v1 = vpop.f32.mrb[7].mxu0 }
 0x1da   :  { %979 = vpow2.f32 %v483_v0 }
 0x1e4   :  { %v980_v2 = vpop.eup %979 }
 0x1e5   :  { %486 = vrot.lane.b32.xlu0 %v980_v2, %s983_s19 }
 0x257   :  { %v487_v9 = vpop.permute.xlu0 %486 }
 0x258   :  { %v489_v10 = vmul.f32 %v487_v9, %v482_v6 }
 0x25a   :  { %v490_v12 = vadd.f32 %v489_v10, %v477_v61 }
 0x25c   :  { %v491_v15 = vpack.c.bf16 %v490_v12, %v490_v12  ;;  %761 = vrot.lane.b32.xlu0 %v490_v12, %s984_s14 }
 0x25e   :  { %906 = vmatmul.mubr.msk.bf16.vlgmr.msra.gmra.mrb[4].mxu1 %vm507_vm2, %v491_v15 }
 0x25f   :  { %675 = vmatpush1.bf16.msra.mxu1 %v955_v14  ;;  %706 = vmatprep.mubr.bf16.mxu1 %v985_v24 }
 0x260   :  { %676 = vmatprep.subr.bf16.mxu1 %v963_v16 }
 0x263   :  { %677 = vmatpush1.bf16.msra.mxu1 %v961_v17 }
 0x264   :  { %678 = vmatprep.subr.bf16.mxu1 %v969_v18 }
 0x267   :  { %679 = vmatpush1.bf16.msra.mxu1 %v967_v19 }
 0x268   :  { %680 = vmatprep.subr.bf16.mxu1 %v975_v20 }
 0x26b   :  { %681 = vmatpush1.bf16.msra.mxu1 %v973_v22 }
 0x2ce   :  { %v762_v25 = vpop.permute.xlu0 %761 }
 0x2cf   :  { %v765_v26 = vsel %vm764_vm3, %v477_v61, %v762_v25 }
 0x2d0   :  { %767 = vst.msk [vmem:[%s1252_s11] sm:$0xff] %vm766_vm4, %v765_v26 }
 0x331   :  { %v545_v28 = vpop.f32.mrb[4].mxu1 }
 0x332   :  { %v546_v29 = vadd.f32 %v819_v27, %v545_v28  ;;  %v907_v30 = vpop.f32.mrb[5].mxu1 }
 0x333   :  { %v548_v31 = vpop.f32.mrb[6].mxu1 }
 0x334   :  { %v551_v32 = vmax.f32 %v546_v29, 0.0  ;;  %v908_v33 = vpop.f32.mrb[7].mxu1 }
 0x336   :  { %v552_v34 = vpack.c.bf16 %v551_v32, %v551_v32 }
 0x338   :  { %838 = vmatmul.mubr.msk.bf16.vlgmr.msra.gmra.mrb[8].mxu1 %vm438_vm1, %v552_v34  ;;  %839 = vmatmul.mubr.msk.bf16.vlgmr.msra.gmra.mrb[8].mxu0 %vm438_vm1, %v552_v34 }
 0x40b   :  { %v708_v46 = vpop.f32.mrb[8].mxu1  ;;  %v749_v47 = vpop.f32.mrb[8].mxu0 }
 0x40c   :  { %v709_v48 = vadd.f32 %v708_v46, %v574_v42  ;;  %v750_v49 = vadd.f32 %v749_v47, %v582_v43  ;;  %v710_v50 = vpop.f32.mrb[9].mxu1  ;;  %v751_v51 = vpop.f32.mrb[9].mxu0 }
 0x40d   :  { %v711_v52 = vadd.f32 %v710_v50, %v578_v44  ;;  %v752_v53 = vadd.f32 %v751_v51, %v586_v45  ;;  %v712_v54 = vpop.f32.mrb[10].mxu1  ;;  %v753_v55 = vpop.f32.mrb[10].mxu0 }
 0x40e   :  { %756 = vst [vmem:[%s1255_s10] sm:$0xff] %v709_v48  ;;  %758 = vst [vmem:[%s1255_s10 + $0x10] sm:$0xff] %v750_v49  ;;  %v713_v56 = vpop.f32.mrb[11].mxu1  ;;  %v754_v57 = vpop.f32.mrb[11].mxu0 }
 0x40f   :  { %757 = vst [vmem:[%s1255_s10 + $0x8] sm:$0xff] %v711_v52  ;;  %759 = vst [vmem:[%s1255_s10 + $0x18] sm:$0xff] %v752_v53 }

</bundles_post_ra>
